<compile_context>
chip_gen: v7x
topology: tpu7x:2x2x1
jax: 0.10.0
libtpu: 0.0.40
codegen_flags: <defaults>
</compile_context>

<pallas_src>
import functools

import jax
import jax.numpy as jnp
from jax.experimental import pallas as pl
from jax.experimental.pallas import tpu as pltpu

_VMEM_LIMIT = 32 * 1024 * 1024


def _round_up(x, m):
    return ((x + m - 1) // m) * m


def _hw_tiling(hw):
    """Returns (hw_pad, t_hw): lane-padded hw and the hw tile size used by all kernels."""
    if hw <= 2048:
        t = _round_up(hw, 128)
        return t, t
    t = 1024
    return _round_up(hw, t), t


# ----------------------------- encoder kernel (fused conv-as-matmul, transposed layout) ----------

def _encoder_kernel(x_ref, w1t_ref, b1_ref, w2t_ref, b2_ref, o_ref):
    """o[c, hw_tile] = w2^T @ relu(w1^T @ patches + b1) + b2 (lane-dense output)."""
    x = x_ref[0]                                                       # [Kp, t_hw] bf16
    h1 = jnp.dot(w1t_ref[...], x, preferred_element_type=jnp.float32) + b1_ref[...]
    h1 = jnp.maximum(h1, 0.0)                                          # [mid, t_hw] f32
    o_ref[0] = jnp.dot(w2t_ref[...], h1,
                       preferred_element_type=jnp.float32) + b2_ref[...]


def encoder(params, x_nchw, hw_pad, t_hw):
    """Synthetic encoder: 3x3/s2 conv + ReLU, then 1x1 conv, as im2col + one fused matmul.

    Input  [N, C, H, W] f32; output features [N, out_ch, hw_pad] f32 (hw in lanes).
    """
    N, C, H, W = x_nchw.shape
    Ho, Wo = H // 2, W // 2
    hw = Ho * Wo

    # im2col directly in the transposed [N, 9C, hw] layout (tap-major, channel-minor rows).
    xp = jnp.pad(x_nchw, ((0, 0), (0, 0), (1, 1), (1, 1)))
    taps = [xp[:, :, dy:dy + 2 * Ho:2, dx:dx + 2 * Wo:2]
            for dy in range(3) for dx in range(3)]                     # each [N, C, Ho, Wo]
    patches = jnp.stack(taps, axis=1).reshape(N, 9 * C, hw)            # [N, 9C, hw]

    K = 9 * C
    Kp = _round_up(K, 16)                                              # bf16 sublane packing
    patches = jnp.pad(patches, ((0, 0), (0, Kp - K), (0, hw_pad - hw)))
    patches = patches.astype(jnp.bfloat16)

    mid = params['w1'].shape[1]
    out_ch = params['w2'].shape[1]
    w1t = jnp.pad(params['w1'].T, ((0, 0), (0, Kp - K))).astype(jnp.bfloat16)   # [mid, Kp]
    b1 = params['b1'].reshape(mid, 1)
    w2t = params['w2'].T                                                        # [out, mid] f32
    b2 = params['b2'].reshape(out_ch, 1)

    n_t = hw_pad // t_hw
    return pl.pallas_call(
        _encoder_kernel,
        out_shape=jax.ShapeDtypeStruct((N, out_ch, hw_pad), jnp.float32),
        grid=(N, n_t),
        in_specs=[
            pl.BlockSpec((1, Kp, t_hw), lambda n, t: (n, 0, t)),
            pl.BlockSpec((mid, Kp), lambda n, t: (0, 0)),
            pl.BlockSpec((mid, 1), lambda n, t: (0, 0)),
            pl.BlockSpec((out_ch, mid), lambda n, t: (0, 0)),
            pl.BlockSpec((out_ch, 1), lambda n, t: (0, 0)),
        ],
        out_specs=pl.BlockSpec((1, out_ch, t_hw), lambda n, t: (n, 0, t)),
        compiler_params=pltpu.CompilerParams(
            dimension_semantics=("parallel", "parallel"),
            vmem_limit_bytes=_VMEM_LIMIT),
    )(patches, w1t, b1, w2t, b2)


# ----------------------------- MPM kernel 1: meta-prototypes (hw-tiled accumulation) -------------

def _proto_kernel(sup_ref, fg_ref, bg_ref, ctrT_ref, proto_ref, num_acc, den_acc, *, protos):
    """Accumulate per-shot masked-softmax prototype numerators/denominators over hw tiles.

    Layout: hw (lane axis) is tiled via the 'arbitrary' grid axis; prototypes are kept in
    [2P, c] orientation (c in lanes).  The -||x||^2 term of D is dropped (softmax-invariant).
    """
    P = protos
    t = pl.program_id(1)

    @pl.when(t == 0)
    def _():
        num_acc[...] = jnp.zeros_like(num_acc)
        den_acc[...] = jnp.zeros_like(den_acc)

    sup = sup_ref[0]                                   # [S, c, t_hw]
    S, c, _ = sup.shape
    ctrT = ctrT_ref[...]                               # [2P, c]

    def group(ctr_g, mask_g):
        # ctr_g: [P, c]; mask_g: [S, t_hw]
        ctr_b = jnp.broadcast_to(ctr_g[None], (S, P, c))
        cross = jnp.einsum('skc,sch->skh', ctr_b, sup,
                           preferred_element_type=jnp.float32)          # [S, P, t_hw]
        c2 = jnp.sum(ctr_g * ctr_g, axis=1, keepdims=True)              # [P, 1]
        D = 2.0 * cross - c2[None, :, :]                                # [S, P, t_hw]
        Dm = jax.nn.softmax(D, axis=1) * mask_g[:, None, :]             # [S, P, t_hw]
        num = jnp.einsum('skh,sch->skc', Dm, sup,
                         preferred_element_type=jnp.float32)            # [S, P, c]
        den = jnp.sum(Dm, axis=2)                                       # [S, P]
        return num, den

    num_fg, den_fg = group(ctrT[:P], fg_ref[0])
    num_bg, den_bg = group(ctrT[P:], bg_ref[0])
    num_acc[0] += num_fg
    num_acc[1] += num_bg
    den_acc[0] += den_fg
    den_acc[1] += den_bg

    @pl.when(t == pl.num_programs(1) - 1)
    def _():
        inv_fg = 1.0 / (den_acc[0] + 1e-6)                              # exact, tiny [S, P]
        inv_bg = 1.0 / (den_acc[1] + 1e-6)
        proto_fg = jnp.mean(num_acc[0] * inv_fg[:, :, None], axis=0)    # [P, c]
        proto_bg = jnp.mean(num_acc[1] * inv_bg[:, :, None], axis=0)    # [P, c]
        proto_ref[0] = jnp.concatenate([proto_fg, proto_bg], axis=0)    # [2P, c]


def compute_protos(sup_fts, sup_fg, sup_bg, ctrT, protos, t_hw):
    B, S, c, hw_pad = sup_fts.shape
    P2 = ctrT.shape[0]
    n_t = hw_pad // t_hw
    kernel = functools.partial(_proto_kernel, protos=protos)
    return pl.pallas_call(
        kernel,
        out_shape=jax.ShapeDtypeStruct((B, P2, c), jnp.float32),
        grid=(B, n_t),
        in_specs=[
            pl.BlockSpec((1, S, c, t_hw), lambda b, t: (b, 0, 0, t)),
            pl.BlockSpec((1, S, t_hw), lambda b, t: (b, 0, t)),
            pl.BlockSpec((1, S, t_hw), lambda b, t: (b, 0, t)),
            pl.BlockSpec((P2, c), lambda b, t: (0, 0)),
        ],
        out_specs=pl.BlockSpec((1, P2, c), lambda b, t: (b, 0, 0)),
        scratch_shapes=[
            pltpu.VMEM((2, S, protos, c), jnp.float32),   # num accumulators (fg, bg)
            pltpu.VMEM((2, S, protos), jnp.float32),      # den accumulators (fg, bg)
        ],
        compiler_params=pltpu.CompilerParams(
            dimension_semantics=("parallel", "arbitrary"),
            vmem_limit_bytes=_VMEM_LIMIT),
    )(sup_fts, sup_fg, sup_bg, ctrT)


# ----------------------------- MPM kernel 2: cosine-similarity prediction ------------------------

def _cosine_kernel(proto_ref, qry_ref, out_ref, *, protos, dist_scalar):
    """Cosine similarity of every query pixel to all 2P prototypes; max within fg / bg groups."""
    P = protos
    proto = proto_ref[0]                                               # [2P, c]
    qry = qry_ref[0]                                                   # [c, t_hw]

    numq = jnp.dot(proto, qry, preferred_element_type=jnp.float32)     # [2P, t_hw]
    pn = jnp.sqrt(jnp.sum(proto * proto, axis=1, keepdims=True))       # [2P, 1]
    qn = jnp.sqrt(jnp.sum(qry * qry, axis=0, keepdims=True))           # [1, t_hw]
    # torch.cosine_similarity clamps each norm separately with eps=1e-8.
    inv_p = dist_scalar / jnp.maximum(pn, 1e-8)                        # [2P, 1]
    inv_q = 1.0 / jnp.maximum(qn, 1e-8)                                # [1, t_hw]
    cos = numq * inv_p * inv_q                                         # [2P, t_hw]

    bg_d = jnp.max(cos[P:], axis=0, keepdims=True)                     # [1, t_hw]
    fg_d = jnp.max(cos[:P], axis=0, keepdims=True)                     # [1, t_hw]
    # channel order matches torch.stack((bg_distance, fg_distance), dim=1)
    out_ref[0] = jnp.concatenate([bg_d, fg_d], axis=0)                 # [2, t_hw]


def cosine_predict(proto, qry_fts, protos, dist_scalar, t_hw):
    B, P2, c = proto.shape
    hw_pad = qry_fts.shape[2]
    n_t = hw_pad // t_hw
    kernel = functools.partial(_cosine_kernel, protos=protos, dist_scalar=dist_scalar)
    return pl.pallas_call(
        kernel,
        out_shape=jax.ShapeDtypeStruct((B, 2, hw_pad), jnp.float32),
        grid=(B, n_t),
        in_specs=[
            pl.BlockSpec((1, P2, c), lambda b, t: (b, 0, 0)),
            pl.BlockSpec((1, c, t_hw), lambda b, t: (b, 0, t)),
        ],
        out_specs=pl.BlockSpec((1, 2, t_hw), lambda b, t: (b, 0, t)),
        compiler_params=pltpu.CompilerParams(
            dimension_semantics=("parallel", "parallel"),
            vmem_limit_bytes=_VMEM_LIMIT),
    )(proto, qry_fts)


# ----------------------------- bilinear upsample kernel ------------------------------------------

def _upsample_kernel(p_ref, wy_ref, wxT_ref, o_ref):
    """Bilinear (align_corners=True) resize: out[c] = Wy @ p[c] @ Wx^T — no in-kernel transposes."""
    p = p_ref[...]                         # [1, C, h, w]
    wy = wy_ref[...]                       # [H, h]
    wxT = wxT_ref[...]                     # [w, W]
    C = p.shape[1]
    rows = []
    for ci in range(C):                    # C == 2 (bg, fg), static unroll
        t = jnp.dot(wy, p[0, ci], preferred_element_type=jnp.float32)          # [H, w]
        rows.append(jnp.dot(t, wxT, preferred_element_type=jnp.float32))       # [H, W]
    o_ref[0] = jnp.stack(rows, axis=0)


def bilinear_weight_matrix(out_size, in_size):
    """Returns [in_size, out_size] interpolation matrix, align_corners=True."""
    if in_size == 1:
        return jnp.ones((1, out_size), jnp.float32)
    src = jnp.arange(out_size, dtype=jnp.float32) * (in_size - 1) / max(out_size - 1, 1)
    lo = jnp.floor(src).astype(jnp.int32)
    hi = jnp.minimum(lo + 1, in_size - 1)
    frac = src - lo.astype(jnp.float32)
    m = jnp.zeros((in_size, out_size), jnp.float32)
    m = m.at[lo, jnp.arange(out_size)].add(1.0 - frac)
    m = m.at[hi, jnp.arange(out_size)].add(frac)
    return m


def bilinear_upsample(pred, H, W):
    # TODO(synk): for very large H, W this should be row-tiled with a 128-padded output lane dim.
    N, C, h, w = pred.shape
    wy = bilinear_weight_matrix(H, h).T    # [H, h]
    wxT = bilinear_weight_matrix(W, w)     # [w, W]
    return pl.pallas_call(
        _upsample_kernel,
        out_shape=jax.ShapeDtypeStruct((N, C, H, W), jnp.float32),
        grid=(N,),
        in_specs=[
            pl.BlockSpec((1, C, h, w), lambda n: (n, 0, 0, 0)),
            pl.BlockSpec((H, h), lambda n: (0, 0)),
            pl.BlockSpec((w, W), lambda n: (0, 0)),
        ],
        out_specs=pl.BlockSpec((1, C, H, W), lambda n: (n, 0, 0, 0)),
        compiler_params=pltpu.CompilerParams(
            dimension_semantics=("parallel",), vmem_limit_bytes=_VMEM_LIMIT),
    )(pred, wy, wxT)


# ----------------------------- model (glue + kernels) --------------------------------------------

def init_params(key, in_ch=3, mid_ch=16, out_ch=32, protos=2):
    k1, k2, k3, k4, k5 = jax.random.split(key, 5)
    return {
        'w1': jax.random.normal(k1, (9 * in_ch, mid_ch), jnp.float32) * 0.1,
        'b1': jax.random.normal(k2, (mid_ch,), jnp.float32) * 0.01,
        'w2': jax.random.normal(k3, (mid_ch, out_ch), jnp.float32) * 0.1,
        'b2': jax.random.normal(k4, (out_ch,), jnp.float32) * 0.01,
        # self.ctr = nn.Parameter(torch.rand(out_channels, protos * 2))
        'ctr': jax.random.uniform(k5, (out_ch, protos * 2), jnp.float32),
    }


def pemp_stage1_forward(params, sup_img, sup_mask, qry_img, protos=2,
                        dist_scalar=20.0, out_shape=None):
    """
    sup_img:  [B, S, 3, H, W] f32   sup_mask: [B, S, 2, H, W] f32 (fg, bg)
    qry_img:  [B, Q, 3, H, W] f32   returns:  [B*Q, 2, H, W] f32
    """
    B, S, C, H, W = sup_img.shape
    Q = qry_img.shape[1]
    assert Q == 1, "protos > 0 path requires Q == 1 (as in the PyTorch reference)"

    img_cat = jnp.concatenate([sup_img, qry_img], axis=1).reshape(B * (S + Q), C, H, W)

    h, w = H // 2, W // 2
    hw = h * w
    hw_pad, t_hw = _hw_tiling(hw)

    feats = encoder(params, img_cat, hw_pad, t_hw)                     # [N, c, hw_pad]
    c = feats.shape[1]
    feats = feats.reshape(B, S + Q, c, hw_pad)
    sup_fts = feats[:, :S]                                             # [B, S, c, hw_pad]
    qry_fts = feats[:, S:].reshape(B, c, hw_pad)                       # Q == 1

    # F.interpolate(sup_mask, (h, w), mode='nearest')
    iy = (jnp.arange(h) * H) // h
    ix = (jnp.arange(w) * W) // w
    sm = sup_mask.reshape(B * S, 2, H, W)[:, :, iy][:, :, :, ix]       # [BS, 2, h, w]
    sup_fg = sm[:, 0].reshape(B, S, hw)
    sup_bg = sm[:, 1].reshape(B, S, hw)
    if hw_pad != hw:
        pad = hw_pad - hw
        sup_fg = jnp.pad(sup_fg, ((0, 0), (0, 0), (0, pad)))           # zero masks in padding
        sup_bg = jnp.pad(sup_bg, ((0, 0), (0, 0), (0, pad)))

    ctrT = params['ctr'].T                                             # [2P, c]
    proto = compute_protos(sup_fts, sup_fg, sup_bg, ctrT, protos, t_hw)      # [B, 2P, c]
    pred = cosine_predict(proto, qry_fts, protos, dist_scalar, t_hw)         # [B, 2, hw_pad]
    pred = pred[:, :, :hw].reshape(B * Q, 2, h, w)

    if out_shape is None:
        out_shape = (H, W)
    return bilinear_upsample(pred, out_shape[0], out_shape[1])         # [BQ, 2, H, W]


if __name__ == "__main__":
    key = jax.random.PRNGKey(0)
    kp, k1, k2, k3 = jax.random.split(key, 4)

    B, S, Q, H, W = 2, 1, 1, 16, 16
    protos, out_ch = 2, 32

    params = init_params(kp, in_ch=3, mid_ch=16, out_ch=out_ch, protos=protos)
    sup_img = jax.random.normal(k1, (B, S, 3, H, W), jnp.float32)
    qry_img = jax.random.normal(k2, (B, Q, 3, H, W), jnp.float32)
    fg = (jax.random.uniform(k3, (B, S, 1, H, W)) > 0.5).astype(jnp.float32)
    sup_mask = jnp.concatenate([fg, 1.0 - fg], axis=2)                 # [B, S, 2, H, W]

    out = pemp_stage1_forward(params, sup_img, sup_mask, qry_img,
                              protos=protos, dist_scalar=20.0)
    out = jax.block_until_ready(out)
    assert out.shape == (B * Q, 2, H, W) and out.dtype == jnp.float32
    print("KERNEL_OK")
</pallas_src>

<mosaic_0001>
module attributes {stable_mosaic.version = 11 : i64} {
  func.func @_encoder_kernel(%arg0: i32, %arg1: i32, %arg2: memref<1x32x128xbf16, #tpu.memory_space<vmem>>, %arg3: memref<16x32xbf16, #tpu.memory_space<vmem>>, %arg4: memref<16x1xf32, #tpu.memory_space<vmem>>, %arg5: memref<32x16xf32, #tpu.memory_space<vmem>>, %arg6: memref<32x1xf32, #tpu.memory_space<vmem>>, %arg7: memref<1x32x128xf32, #tpu.memory_space<vmem>>) attributes {dimension_semantics = [#tpu.dimension_semantics<parallel>, #tpu.dimension_semantics<parallel>], iteration_bounds = array<i64: 4, 1>, scalar_prefetch = 0 : i64, scratch_operands = 0 : i64, tpu.core_type = #tpu.core_type<tc>, window_params = [{transform_indices = @transform_0, window_bounds = array<i64: 1, 32, 128>}, {pipeline_mode = #tpu.pipeline_mode<synchronous>, transform_indices = @transform_1, window_bounds = array<i64: 16, 32>}, {pipeline_mode = #tpu.pipeline_mode<synchronous>, transform_indices = @transform_2, window_bounds = array<i64: 16, 1>}, {pipeline_mode = #tpu.pipeline_mode<synchronous>, transform_indices = @transform_3, window_bounds = array<i64: 32, 16>}, {pipeline_mode = #tpu.pipeline_mode<synchronous>, transform_indices = @transform_4, window_bounds = array<i64: 32, 1>}, {transform_indices = @transform_5, window_bounds = array<i64: 1, 32, 128>}]} {
    %c0 = arith.constant 0 : index
    %c0_0 = arith.constant 0 : index
    %c0_1 = arith.constant 0 : index
    %0 = vector.load %arg2[%c0, %c0_0, %c0_1] : memref<1x32x128xbf16, #tpu.memory_space<vmem>>, vector<1x32x128xbf16>
    %1 = vector.shape_cast %0 : vector<1x32x128xbf16> to vector<32x128xbf16>
    %c0_2 = arith.constant 0 : index
    %c0_3 = arith.constant 0 : index
    %2 = vector.load %arg3[%c0_2, %c0_3] : memref<16x32xbf16, #tpu.memory_space<vmem>>, vector<16x32xbf16>
    %cst = arith.constant dense<0.000000e+00> : vector<16x128xf32>
    %3 = tpu.matmul %2, %1, %cst {dimension_numbers = #tpu.dot_dimension_numbers<[1], [0], [0], [1], [0, 0, 1, 1], [], []>} : vector<16x32xbf16>, vector<32x128xbf16>, vector<16x128xf32> -> vector<16x128xf32>
    %c0_4 = arith.constant 0 : index
    %c0_5 = arith.constant 0 : index
    %4 = vector.load %arg4[%c0_4, %c0_5] : memref<16x1xf32, #tpu.memory_space<vmem>>, vector<16x1xf32>
    %5 = vector.broadcast %4 : vector<16x1xf32> to vector<16x128xf32>
    %6 = arith.addf %3, %5 : vector<16x128xf32>
    %cst_6 = arith.constant 0.000000e+00 : f32
    %7 = vector.broadcast %cst_6 : f32 to vector<16x128xf32>
    %8 = arith.maximumf %6, %7 : vector<16x128xf32>
    %c0_7 = arith.constant 0 : index
    %c0_8 = arith.constant 0 : index
    %9 = vector.load %arg5[%c0_7, %c0_8] : memref<32x16xf32, #tpu.memory_space<vmem>>, vector<32x16xf32>
    %cst_9 = arith.constant dense<0.000000e+00> : vector<32x128xf32>
    %10 = tpu.matmul %9, %8, %cst_9 {dimension_numbers = #tpu.dot_dimension_numbers<[1], [0], [0], [1], [0, 0, 1, 1], [], []>} : vector<32x16xf32>, vector<16x128xf32>, vector<32x128xf32> -> vector<32x128xf32>
    %c0_10 = arith.constant 0 : index
    %c0_11 = arith.constant 0 : index
    %11 = vector.load %arg6[%c0_10, %c0_11] : memref<32x1xf32, #tpu.memory_space<vmem>>, vector<32x1xf32>
    %12 = vector.broadcast %11 : vector<32x1xf32> to vector<32x128xf32>
    %13 = arith.addf %10, %12 : vector<32x128xf32>
    %c0_12 = arith.constant 0 : index
    %c0_13 = arith.constant 0 : index
    %c0_14 = arith.constant 0 : index
    %14 = vector.load %arg7[%c0_12, %c0_13, %c0_14] : memref<1x32x128xf32, #tpu.memory_space<vmem>>, vector<1x32x128xf32>
    %15 = vector.shape_cast %14 : vector<1x32x128xf32> to vector<32x128xf32>
    %16 = vector.shape_cast %13 : vector<32x128xf32> to vector<1x32x128xf32>
    tpu.vector_store %arg7[%c0_12, %c0_13, %c0_14], %16 {strides = array<i32>} : memref<1x32x128xf32, #tpu.memory_space<vmem>>, vector<1x32x128xf32>,
    return
  }
  func.func @transform_0(%arg0: i32, %arg1: i32) -> (i32, i32, i32) {
    %c0_i32 = arith.constant 0 : i32
    %c0_i32_0 = arith.constant 0 : i32
    return %arg0, %c0_i32, %arg1 : i32, i32, i32
  }
  func.func @transform_1(%arg0: i32, %arg1: i32) -> (i32, i32) {
    %c0_i32 = arith.constant 0 : i32
    %c0_i32_0 = arith.constant 0 : i32
    %c0_i32_1 = arith.constant 0 : i32
    return %c0_i32, %c0_i32_0 : i32, i32
  }
  func.func @transform_2(%arg0: i32, %arg1: i32) -> (i32, i32) {
    %c0_i32 = arith.constant 0 : i32
    %c0_i32_0 = arith.constant 0 : i32
    %c0_i32_1 = arith.constant 0 : i32
    return %c0_i32, %c0_i32_0 : i32, i32
  }
  func.func @transform_3(%arg0: i32, %arg1: i32) -> (i32, i32) {
    %c0_i32 = arith.constant 0 : i32
    %c0_i32_0 = arith.constant 0 : i32
    %c0_i32_1 = arith.constant 0 : i32
    return %c0_i32, %c0_i32_0 : i32, i32
  }
  func.func @transform_4(%arg0: i32, %arg1: i32) -> (i32, i32) {
    %c0_i32 = arith.constant 0 : i32
    %c0_i32_0 = arith.constant 0 : i32
    %c0_i32_1 = arith.constant 0 : i32
    return %c0_i32, %c0_i32_0 : i32, i32
  }
  func.func @transform_5(%arg0: i32, %arg1: i32) -> (i32, i32, i32) {
    %c0_i32 = arith.constant 0 : i32
    %c0_i32_0 = arith.constant 0 : i32
    return %arg0, %c0_i32, %arg1 : i32, i32, i32
  }
}

</mosaic_0001>

<bundles_post_ra>
// kernel: tpu_custom_call.1
= control target key start
LH: loop header
LB: loop body
LE: loop exit
PB: predicated region body
PF: predicated region fallthrough
CT: control target
= control target key end

     0   :  { %10 = vsyncpa [#allocation3], 0  ;;  %s941_s0 = inlined_call_operand.vmem [shape: bf16[4,32,128], index: 0, kind: input, shape index: {}]   ;;  %s942_s1 = inlined_call_operand.vmem [shape: bf16[16,32], index: 1, kind: input, shape index: {}]   ;;  %s943_s2 = inlined_call_operand.vmem [shape: f32[16,1], index: 2, kind: input, shape index: {}]   ;;  %s944_s3 = inlined_call_operand.vmem [shape: f32[32,16], index: 3, kind: input, shape index: {}]   ;;  %s945_s4 = inlined_call_operand.vmem [shape: f32[32,1], index: 4, kind: input, shape index: {}]   ;;  %s946_s5 = inlined_call_operand.hbm [shape: f32[4,32,128], index: 5, kind: output, shape index: {}]  }
   0x1   :  { %12 = vsyncpa [#allocation3 + $0x1], 0  ;;  %s789_s18 = smov 0   ;;  %s791_s19 = smov 0  }
   0x2   :  { %s793_s20 = smov 0   ;;  %s795_s21 = smov 0  }
   0x3   :  { %s797_s22 = smov 0   ;;  %s799_s23 = smov 0  }
   0x4 LB: > { %s554_s24 = sadd.s32 4294967295, %s751_s23   ;;  %s555_s25 = sadd.s32 4294967294, %s751_s23   ;;  %s751_s23 = sphi %s799_s23, %s18_s23   ;;  %s747_s22 = sphi %s797_s22, %s953_s22   ;;  %s743_s21 = sphi %s795_s21, %s952_s21   ;;  %s739_s20 = sphi %s793_s20, %s951_s20   ;;  %s735_s19 = sphi %s791_s19, %s950_s19   ;;  %s731_s18 = sphi %s789_s18, %s949_s18  }
   0x5   : > { %s30_s26 = sadd.s32 1, %s747_s22  ;;  %s151_s27 = sadd.s32 1, %s739_s20 }
   0x6   : > { %p32_p0 = scmp.ge.s32.totalorder %s30_s26, 4  ;;  %p161_p1 = scmp.ne.s32.totalorder %s739_s20, %s735_s19 }
   0x7   : > { %p162_p2 = scmp.eq.s32.totalorder %s554_s24, 3  ;;  %p167_p3 = scmp.ne.s32.totalorder %s735_s19, %s731_s18 }
   0x8   : > { %s955_s26 = smov (%p32_p0, %s30_s26), 0  ;;  %p168_p5 = scmp.eq.s32.totalorder %s555_s25, 3 }
   0x9   : > { %p829_p4 = por %p162_p2, %p161_p1  ;;  %s146_s29 = ssub.s32 %s747_s22, %s955_s26 }
   0xa   : > { %p558_p6 = scmp.ge.s32.totalorder %s751_s23, 1  ;;  %p149_p7 = scmp.eq.s32.totalorder %s146_s29, 0 }
   0xb   : > { %p836_p8 = por %p168_p5, %p167_p3  ;;  %p209_p9 = scmp.lt.s32.totalorder %s751_s23, 5 }
   0xc   : > { %s842_s6 = scalar_select %p149_p7, %s739_s20, %s151_s27  }
   0xd   : > { %p210_p10 = pnand %p558_p6, %p209_p9 }
   0xe   : > { %p240_p11 = scmp.lt.s32.totalorder (!%p210_p10), %s743_s21, 3  ;;  %v753_v0 = vmov (!%p210_p10), 0.0   ;;  %vm754_vm0 = vmmov (!%p210_p10), 0   ;;  %v255_v1 = vld [vmem:[%s943_s2] sm:$0xff] (!%p210_p10)  ;;  %v755_v2 = vmov (!%p210_p10), 0   ;;  %v256_v3 = vld [vmem:[%s943_s2 + $0x8] sm:$0xff] (!%p210_p10) }
   0xf   : > { %213 = sbr.rel (%p210_p10) target bundleno = 492 (0x1ec), region = 40  ;;  %586 = vmatprep.subr.bf16.mxu0 (!%p210_p10), %v753_v0  ;;  %590 = vmatprep.mubr.msk.bf16.mxu0 (!%p210_p10), %vm754_vm0, %v753_v0  ;;  %v337_v6 = vld [vmem:[%s945_s4 + $0x10] sm:$0xff] (!%p210_p10)  ;;  %v672_v7 = vld [vmem:[%s942_s1] sm:$0xff] (!%p210_p10)   ;;  %vm284_vm1 = vcmask (!%p210_p10), 261120   ;;  %vm359_vm2 = vcmask (!%p210_p10), 130048   ;;  %v336_v10 = vld [vmem:[%s945_s4 + $0x8] sm:$0xff] (!%p210_p10) }
  0x10   : > { %668 = vset.pattern.permute.xlu0 (!%p210_p10), %v755_v2  ;;  %669 = vset.pattern.permute.xlu1 (!%p210_p10), %v755_v2  ;;  %v331_v8 = vld [vmem:[%s944_s3] sm:$0xff] (!%p210_p10)  ;;  %v338_v11 = vld [vmem:[%s945_s4 + $0x18] sm:$0xff] (!%p210_p10)  ;;  %v332_v23 = vld [vmem:[%s944_s3 + $0x8] sm:$0xff] (!%p210_p10)  ;;  %s237_s25 = sand.u32 (!%p210_p10), 1, %s735_s19   ;;  %s576_s8 = sshll.u32 (!%p210_p10), %s743_s21, 9 }
  0x11   : > { %259 = vperm.xlu0 (!%p210_p10), %668, %v255_v1   ;;  %598 = vmatprep.mubr.msk.f32.mxu1 (!%p210_p10), %vm359_vm2, %v331_v8  ;;  %v335_v9 = vld [vmem:[%s945_s4] sm:$0xff] (!%p210_p10)  ;;  %v333_v24 = vld [vmem:[%s944_s3 + $0x10] sm:$0xff] (!%p210_p10)  ;;  %v334_v25 = vld [vmem:[%s944_s3 + $0x18] sm:$0xff] (!%p210_p10)  ;;  %s559_s27 = sshll.u32 (!%p210_p10), %s237_s25, 5  ;;  %s893_s11 = scalar_lea.hbm (!%p210_p10), %s946_s5, %s576_s8 }
  0x12   : > { %341 = vperm.xlu1 (!%p210_p10), %669, %v335_v9   ;;  %s239_s29 = scalar_lea.vmem (!%p210_p10), [#allocation2], %s559_s27  ;;  %s756_s13 = smov (!%p210_p10), [#allocation2]  }
  0x13   : > { %s476_s7 = sshll.u32 (!%p210_p10), %s239_s29, 4  ;;  %s677_s14 = sshll.u32 (!%p210_p10), %s756_s13, 4  ;;  %s888_s7 = int_to_ptr.vmem [resolvable:$true] %s476_s7  ;;  %s678_s14 = int_to_ptr.vmem [resolvable:$false] %s677_s14 }
  0x14   : > { %s673_s12 = scalar_lea.vmem (!%p210_p10), %s888_s7, 512  ;;  %p680_p1 = scmp.lt.s32.totalorder (!%p210_p10), %s888_s7, %s678_s14 }
  0x15   : > { %264 = vperm.xlu0 (!%p210_p10), %668, %v256_v3   ;;  %p674_p12 = scmp.ne.s32.totalorder (!%p210_p10), %s888_s7, %s673_s12 }
  0x16   : > { %s241_s9 = scalar_select %p240_p11, %s743_s21, 3  ;;  %346 = vperm.xlu1 %669, %v336_v10  }
  0x17   : > { %s895_s21 = scalar_lea.sflag [#allocation3], %s237_s25  ;;  %p675_p13 = pnand %p674_p12, %p829_p4 }
  0x18   : > { %s575_s10 = sshll.u32 %s241_s9, 4 }
  0x19   : > { %s247_s15 = scalar_lea.vmem %s941_s0, %s575_s10  ;;  %351 = vperm.xlu0 %668, %v337_v6   ;;  %p676_p0 = pneg %p675_p13 }
  0x1a   : > { %v670_v4 = vld [vmem:[%s247_s15] sm:$0xff]   ;;  %v671_v5 = vld [vmem:[%s247_s15 + $0x8] sm:$0xff]   ;;  %356 = vperm.xlu1 %669, %v338_v11   ;;  %s679_s15 = scalar_lea.vmem %s678_s14, 1024 }
  0x1b   : > { %587 = vmatpush3.bf16.msra.mxu0 %v670_v4  ;;  %p681_p2 = scmp.lt.s32.totalorder %s679_s15, %s673_s12 }
  0x1c   : > { %588 = vmatprep.subr.bf16.mxu0 %v753_v0 }
  0x1d   : > { %p682_p3 = por %p681_p2, %p680_p1 }
  0x1f   : > { %589 = vmatpush3.bf16.msra.mxu0 %v671_v5  ;;  %p683_p5 = pnand %p682_p3, %p676_p0 }
  0x22   : > { %591 = vmatmul.mubr.msk.bf16.vlgmr.msra.gmra.mrb[0].mxu0 %vm284_vm1, %v672_v7 }
  0x90   : > { %v260_v12 = vpop.permute.xlu0 %259 }
  0x91   : > { %v342_v26 = vpop.permute.xlu1 %341 }
  0x94   : > { %v265_v16 = vpop.permute.xlu0 %264 }
  0x95   : > { %v347_v27 = vpop.permute.xlu1 %346 }
  0x98   : > { %v352_v34 = vpop.permute.xlu0 %351 }
  0x99   : > { %v357_v32 = vpop.permute.xlu1 %356 }
  0xf5   : > { %v322_v13 = vpop.f32.mrb[0].mxu0 }
  0xf6   : > { %v323_v14 = vadd.f32 %v322_v13, %v260_v12  ;;  %v592_v15 = vpop.f32.mrb[1].mxu0 }
  0xf7   : > { %v325_v17 = vpop.f32.mrb[2].mxu0 }
  0xf8   : > { %v326_v18 = vadd.f32 %v325_v17, %v265_v16  ;;  %v593_v19 = vpop.f32.mrb[3].mxu0  ;;  %v329_v20 = vmax.f32 %v323_v14, 0.0 }
  0xfa   : > { %v330_v21 = vmax.f32 %v326_v18, 0.0 }
  0xfc   : > { %v604_v22 = vpack.c.bf16 %v330_v21, %v329_v20 }
  0xfe   : > { %605 = vmatprep.subr.bf16.mxu1 %v604_v22 }
  0xff   : > { %607 = vmatpush3.bf16.msra.mxu1 %v604_v22 }
 0x102   : > { %599 = vmatmul.mubr.msk.f32.vlgmr.msra.gmra.mrb[0].mxu1 %vm359_vm2, %v332_v23 }
 0x103   : > { %601 = vmatprep.mubr.msk.f32.mxu1 %vm359_vm2, %v333_v24 }
 0x106   : > { %602 = vmatmul.mubr.msk.f32.gmra.mrb[2].mxu1 %vm359_vm2, %v334_v25 }
 0x1d5   : > { %v600_v28 = vpop.f32.mrb[0].mxu1 }
 0x1d6   : > { %v444_v29 = vadd.f32 %v600_v28, %v347_v27  ;;  %v438_v30 = vpop.f32.mrb[1].mxu1 }
 0x1d7   : > { %v439_v31 = vadd.f32 %v438_v30, %v342_v26 }
 0x1d8   : > { %458 = vst [vmem:[%s239_s29 + $0x8] sm:$0xff] %v444_v29 }
 0x1d9   : > { %457 = vst [vmem:[%s239_s29] sm:$0xff] %v439_v31  ;;  %v603_v33 = vpop.f32.mrb[2].mxu1 }
 0x1da   : > { %v454_v35 = vadd.f32 %v603_v33, %v357_v32  ;;  %v448_v36 = vpop.f32.mrb[3].mxu1 }
 0x1db   : > { %v449_v37 = vadd.f32 %v448_v36, %v352_v34 }
 0x1dc   : > { %460 = vst [vmem:[%s239_s29 + $0x18] sm:$0xff] %v454_v35 }
 0x1dd   : > { %459 = vst [vmem:[%s239_s29 + $0x10] sm:$0xff] %v449_v37 }
 0x1de   : > { %686 = shalt.err (!%p683_p5)
}
 0x1df   : > { %s687_s16 = scalar_lea.hbm %s893_s11, 512  ;;  %s691_s25 = scalar_lea.hbm %s946_s5, 2048 }
 0x1e0   : > { %p688_p6 = scmp.ne.s32.totalorder %s893_s11, %s687_s16  ;;  %p692_p10 = scmp.lt.u32.totalorder %s893_s11, %s946_s5 }
 0x1e1   : > { %p693_p11 = scmp.lt.u32.totalorder %s691_s25, %s687_s16  ;;  %p695_p13 = scmp.lt.u32.totalorder %s687_s16, %s893_s11 }
 0x1e2   : > { %p689_p7 = pnand %p688_p6, %p829_p4 }
 0x1e3   : > { %p694_p12 = por %p693_p11, %p692_p10 }
 0x1e4   : > { %p690_p9 = pneg %p689_p7 }
 0x1e5   : > { %p696_p0 = por %p695_p13, %p694_p12 }
 0x1e7   : > { %p697_p1 = pnand %p696_p0, %p690_p9 }
 0x1e9   : > { %700 = shalt.err (!%p697_p1)
}
 0x1ea   : > { %s757_s8 = smov 128   ;;  %s758_s9 = smov 8  }
 0x1eb   : > { %608 = dma.vmem_to_hbm [thread:$0]  (%p829_p4), %s888_s7, 512, %s893_s11, %s895_s21, %s757_s8, %s757_s8, %s758_s9  }
 0x1ec PF: > { %p614_p2 = scmp.ge.s32.totalorder %s751_s23, 2  ;;  %s491_s10 = sand.u32 1, %s731_s18  }
 0x1ed   : > { %s492_s12 = scalar_lea.sflag [#allocation3], %s491_s10 }
 0x1ee   : > { %p611_p3 = pnand %p614_p2, %p836_p8 }
 0x1f0   : > { %726 = dma.done.wait (!%p611_p3), %s492_s12, 512  }
 0x1f1   : > { %728 = vsyncadd (!%p611_p3), %s492_s12, 4294966784  ;;  %s18_s23 = sadd.s32 1, %s751_s23   ;;  %s949_s18 = smov %s735_s19 }
 0x1f2   : > { %p15_p5 = scmp.ge.s32.totalorder %s18_s23, 6   ;;  %s950_s19 = smov %s739_s20 }
 0x1f3   : > { %s951_s20 = smov %s842_s6  ;;  %s952_s21 = smov %s747_s22 }
 0x1f4   : > { %s953_s22 = smov %s955_s26  ;;  %17 = sbr.rel (!%p15_p5) target bundleno = 4 (0x4), region = 75 }
 0x1fb   :  { %497 = vsyncpa [#allocation3], 1 }
 0x1fc   :  { %499 = vsyncpa [#allocation3 + $0x1], 1 }

</bundles_post_ra>
